<compile_context>
chip_gen: v7x
topology: tpu7x:2x2x1
jax: 0.10.0
libtpu: 0.0.40
codegen_flags: <defaults>
</compile_context>

<pallas_src>
import jax
import jax.numpy as jnp
from jax.experimental import pallas as pl
from jax.experimental.pallas import tpu as pltpu


def _logreg_kernel(b_ref, x_ref, w_ref, o_ref):
    """One batch tile: z = x_packed @ W_blockdiag + b ; y = sigmoid(z).

    x_ref : (TB, Fp)   VMEM, lane-dense packed rows (Fp = pack * F)
    w_ref : (Fp, pack) VMEM, block-diagonal weight, resident across the grid
    b_ref : (1, 1)     SMEM scalar bias
    o_ref : (TB, pack) VMEM output tile
    """
    # The block-diagonal weight makes one MXU matmul perform all `pack` per-sample
    # reductions (column g only sees sample g's F feature lanes).  Exact f32 accumulate.
    z = jnp.dot(x_ref[...], w_ref[...], preferred_element_type=jnp.float32)
    z = z + b_ref[0, 0]
    # Numerically stable two-sided sigmoid: exp always sees a non-positive argument
    # (EUP op); the single divide stays exact — see header note on item 7.
    e = jnp.exp(-jnp.abs(z))
    inv = pl.reciprocal(1.0 + e, approx=False)
    o_ref[...] = (jnp.where(z >= 0.0, 1.0, e) * inv).astype(o_ref.dtype)


def _choose_batch_tile(n_rows, row_bytes, *, target_tile_bytes=2 << 20, min_tiles=4):
    """Pick the per-grid-step row count for the streamed x tiles.

    * ~2 MiB per tile keeps the HBM DMA near roofline (measured ~63% at 256 KiB vs
      ~85%+ at >=1 MiB tiles) while 3 in-flight buffers stay ~6 MiB — comfortably under
      every generation's scoped-VMEM default (v5e 16 MiB, v6e/v7x 32 MiB) and v7x's
      64 MiB physical VMEM, so double/triple buffering never silently degrades.
    * When enough rows exist, cap the tile so the grid has >= min_tiles (else >= 2)
      even steps: dimension_semantics=("parallel",) then actually spans both v7x
      TensorCores and the pipeline has steps to overlap.
    """
    tb = max(8, (target_tile_bytes // row_bytes) // 8 * 8)
    for want in (min_tiles, 2):
        split = (n_rows // want) // 8 * 8
        if split >= 8:
            tb = min(tb, split)
            break
    if tb >= n_rows:
        return n_rows          # single full-extent tile (block == array, always legal)
    return tb


def logistic_forward(x, weight, bias):
    """Forward of nn.Linear(F, 1) + sigmoid.

    x: (B, F) f32, weight: (1, F) f32 (torch layout), bias: (1,) f32 -> (B, 1) f32.
    """
    B, F = x.shape
    x = x.astype(jnp.float32)
    w = weight.reshape(1, F).astype(jnp.float32)
    b = bias.reshape(1, 1).astype(jnp.float32)

    # ---- Lane packing: put `pack` samples side by side in one 128-lane row. ----
    if F <= 128 and 128 % F == 0:
        pack = 128 // F
    else:
        pack = 1  # TODO(synk): tile the feature dimension for very large / odd F.
    B_pad = -(-B // pack) * pack
    if B_pad != B:
        x = jnp.pad(x, ((0, B_pad - B), (0, 0)))           # pad rows are sliced off below
    n_rows = B_pad // pack
    Fp = pack * F
    x_packed = x.reshape(n_rows, Fp)                        # free: contiguous in HBM

    # Block-diagonal weight (Fp, pack): column g carries w over sample g's feature lanes.
    w_blk = jnp.kron(jnp.eye(pack, dtype=jnp.float32), w.reshape(F, 1))

    row_bytes = Fp * 4
    TB = _choose_batch_tile(n_rows, row_bytes)
    num_tiles = pl.cdiv(n_rows, TB)

    x_spec = pl.BlockSpec(
        (TB, Fp),
        lambda i: (i, 0),
        # 3-deep buffering hides DMA issue/turnaround at step boundaries (per-step
        # compute is only a few VALU/MXU us); one extra ~2 MiB tile of VMEM.
        pipeline_mode=pl.Buffered(3) if num_tiles >= 3 else None,
    )

    out = pl.pallas_call(
        _logreg_kernel,
        out_shape=jax.ShapeDtypeStruct((n_rows, pack), jnp.float32),
        grid_spec=pl.GridSpec(
            grid=(num_tiles,),
            in_specs=[
                pl.BlockSpec(memory_space=pltpu.SMEM),        # bias scalar, SMEM-resident
                x_spec,                                       # streamed, lane-dense batch tiles
                pl.BlockSpec((Fp, pack), lambda i: (0, 0)),   # block-diag weight, resident
            ],
            out_specs=pl.BlockSpec((TB, pack), lambda i: (i, 0)),
        ),
        compiler_params=pltpu.CompilerParams(
            dimension_semantics=("parallel",),                # shard row tiles across v7x TCs
        ),
        cost_estimate=pl.CostEstimate(                        # small & memory-bound hint for XLA
            flops=2 * B * F,
            transcendentals=B,
            bytes_accessed=4 * (B * F + B + F),
        ),
    )(b, x_packed, w_blk)

    # Packed row r holds samples [r*pack + 0, ..., r*pack + pack-1], so a row-major
    # reshape restores sample order; the slice drops any padded rows.
    return out.reshape(B_pad, 1)[:B]


def logistic_forward_ref(x, weight, bias):
    return jax.nn.sigmoid(x @ weight.T + bias)


if __name__ == "__main__":
    key = jax.random.PRNGKey(0)
    kx, kw, kb, kx2 = jax.random.split(key, 4)

    B, F = 8, 32                      # batch=8, n_input_features=32
    x = jax.random.normal(kx, (B, F), dtype=jnp.float32)
    # Deterministic parameter init (mimics nn.Linear uniform(-1/sqrt(F), 1/sqrt(F)))
    bound = 1.0 / jnp.sqrt(jnp.float32(F))
    weight = jax.random.uniform(kw, (1, F), minval=-bound, maxval=bound, dtype=jnp.float32)
    bias = jax.random.uniform(kb, (1,), minval=-bound, maxval=bound, dtype=jnp.float32)

    out = logistic_forward(x, weight, bias)
    jax.block_until_ready(out)
    ref = logistic_forward_ref(x, weight, bias)
    assert out.shape == (B, 1)
    # 2e-5: MXU block-diag reduction order differs slightly from the XLA reference reduce.
    assert jnp.allclose(out, ref, atol=2e-5, rtol=2e-5), float(jnp.max(jnp.abs(out - ref)))

    # Larger batch: exercises packing (2048 samples -> 512 lane-dense rows), a 4-step
    # "parallel" grid (megacore on v7x) and the Buffered(3) x pipeline.
    B2 = 2048
    x2 = jax.random.normal(kx2, (B2, F), dtype=jnp.float32)
    out2 = logistic_forward(x2, weight, bias)
    jax.block_until_ready(out2)
    ref2 = logistic_forward_ref(x2, weight, bias)
    assert out2.shape == (B2, 1)
    assert jnp.allclose(out2, ref2, atol=2e-5, rtol=2e-5), float(jnp.max(jnp.abs(out2 - ref2)))

    # Odd batch (not a multiple of the pack factor): exercises the pad/slice path.
    B3 = 37
    x3 = jax.random.normal(kx, (B3, F), dtype=jnp.float32)
    out3 = logistic_forward(x3, weight, bias)
    jax.block_until_ready(out3)
    ref3 = logistic_forward_ref(x3, weight, bias)
    assert out3.shape == (B3, 1)
    assert jnp.allclose(out3, ref3, atol=2e-5, rtol=2e-5)

    print("KERNEL_OK")
</pallas_src>

<mosaic_0001>
module attributes {stable_mosaic.version = 11 : i64} {
  func.func @_logreg_kernel(%arg0: i32, %arg1: memref<1x1xf32, #tpu.memory_space<smem>>, %arg2: memref<2x128xf32, #tpu.memory_space<vmem>>, %arg3: memref<128x4xf32, #tpu.memory_space<vmem>>, %arg4: memref<2x4xf32, #tpu.memory_space<vmem>>) attributes {dimension_semantics = [#tpu.dimension_semantics<parallel>], iteration_bounds = array<i64: 1>, scalar_prefetch = 0 : i64, scratch_operands = 0 : i64, tpu.core_type = #tpu.core_type<tc>, window_params = [{transform_indices = @transform_0, window_bounds = array<i64: 1, 1>}, {transform_indices = @transform_1, window_bounds = array<i64: 2, 128>}, {pipeline_mode = #tpu.pipeline_mode<synchronous>, transform_indices = @transform_2, window_bounds = array<i64: 128, 4>}, {transform_indices = @transform_3, window_bounds = array<i64: 2, 4>}]} {
    %c0 = arith.constant 0 : index
    %c0_0 = arith.constant 0 : index
    %0 = vector.load %arg2[%c0, %c0_0] : memref<2x128xf32, #tpu.memory_space<vmem>>, vector<2x128xf32>
    %c0_1 = arith.constant 0 : index
    %c0_2 = arith.constant 0 : index
    %1 = vector.load %arg3[%c0_1, %c0_2] : memref<128x4xf32, #tpu.memory_space<vmem>>, vector<128x4xf32>
    %cst = arith.constant dense<0.000000e+00> : vector<2x4xf32>
    %2 = tpu.matmul %0, %1, %cst {dimension_numbers = #tpu.dot_dimension_numbers<[1], [0], [0], [1], [0, 0, 1, 1], [], []>} : vector<2x128xf32>, vector<128x4xf32>, vector<2x4xf32> -> vector<2x4xf32>
    %c0_3 = arith.constant 0 : index
    %c0_4 = arith.constant 0 : index
    %3 = memref.load %arg1[%c0_3, %c0_4] : memref<1x1xf32, #tpu.memory_space<smem>>
    %4 = vector.broadcast %3 : f32 to vector<2x4xf32>
    %5 = arith.addf %2, %4 : vector<2x4xf32>
    %6 = math.absf %5 : vector<2x4xf32>
    %cst_5 = arith.constant 0.000000e+00 : f32
    %7 = vector.broadcast %cst_5 : f32 to vector<2x4xf32>
    %8 = arith.subf %7, %6 : vector<2x4xf32>
    %9 = math.exp %8 : vector<2x4xf32>
    %cst_6 = arith.constant 1.000000e+00 : f32
    %10 = vector.broadcast %cst_6 : f32 to vector<2x4xf32>
    %11 = arith.addf %10, %9 : vector<2x4xf32>
    %12 = tpu.reciprocal %11 : vector<2x4xf32> -> vector<2x4xf32>
    %cst_7 = arith.constant 0.000000e+00 : f32
    %13 = vector.broadcast %cst_7 : f32 to vector<2x4xf32>
    %14 = arith.cmpf oge, %5, %13 : vector<2x4xf32>
    %cst_8 = arith.constant 1.000000e+00 : f32
    %15 = vector.broadcast %cst_8 : f32 to vector<2x4xf32>
    %16 = arith.select %14, %15, %9 : vector<2x4xi1>, vector<2x4xf32>
    %17 = arith.mulf %16, %12 : vector<2x4xf32>
    %c0_9 = arith.constant 0 : index
    %c0_10 = arith.constant 0 : index
    %18 = vector.load %arg4[%c0_9, %c0_10] : memref<2x4xf32, #tpu.memory_space<vmem>>, vector<2x4xf32>
    tpu.vector_store %arg4[%c0_9, %c0_10], %17 {strides = array<i32>} : memref<2x4xf32, #tpu.memory_space<vmem>>, vector<2x4xf32>,
    return
  }
  func.func @transform_0(%arg0: i32) -> (i32, i32) {
    %c0_i32 = arith.constant 0 : i32
    %c0_i32_0 = arith.constant 0 : i32
    %c0_i32_1 = arith.constant 0 : i32
    return %c0_i32, %c0_i32_0 : i32, i32
  }
  func.func @transform_1(%arg0: i32) -> (i32, i32) {
    %c0_i32 = arith.constant 0 : i32
    %c0_i32_0 = arith.constant 0 : i32
    return %arg0, %c0_i32 : i32, i32
  }
  func.func @transform_2(%arg0: i32) -> (i32, i32) {
    %c0_i32 = arith.constant 0 : i32
    %c0_i32_0 = arith.constant 0 : i32
    %c0_i32_1 = arith.constant 0 : i32
    return %c0_i32, %c0_i32_0 : i32, i32
  }
  func.func @transform_3(%arg0: i32) -> (i32, i32) {
    %c0_i32 = arith.constant 0 : i32
    %c0_i32_0 = arith.constant 0 : i32
    return %arg0, %c0_i32 : i32, i32
  }
}

</mosaic_0001>

<bundles_post_ra>
// kernel: tpu_custom_call.1
= control target key start
LH: loop header
LB: loop body
LE: loop exit
PB: predicated region body
PF: predicated region fallthrough
CT: control target
= control target key end

     0   :  { %v238_v3 = vmov 0.0|0.0   ;;  %vm239_vm0 = vmmov 0   ;;  %v240_v6 = vmov 0.0   ;;  %s328_s0 = inlined_call_operand.<no memory space> [shape: f32[1,1], index: 0, kind: input, shape index: {}]   ;;  %s329_s1 = inlined_call_operand.vmem [shape: f32[2,128], index: 1, kind: input, shape index: {}]   ;;  %s330_s2 = inlined_call_operand.vmem [shape: f32[128,4], index: 2, kind: input, shape index: {}]   ;;  %s331_s3 = inlined_call_operand.hbm [shape: f32[2,4], index: 3, kind: output, shape index: {}]  }
   0x1   :  { %v17_v0 = vld [vmem:[%s330_s2] sm:$0xff]  ;;  %v18_v1 = vld [vmem:[%s330_s2 + $0x8] sm:$0xff]  ;;  %v19_v2 = vld [vmem:[%s330_s2 + $0x10] sm:$0xff]  ;;  %182 = vmatprep.subr.bf16.mxu0 %v238_v3  ;;  %179 = vmatprep.mubr.msk.f32.mxu0 %vm239_vm0, %v240_v6 }
   0x2   :  { %v183_v4 = vpack.c.bf16 %v18_v1, %v17_v0  ;;  %v20_v5 = vld [vmem:[%s330_s2 + $0x18] sm:$0xff]  ;;  %v21_v8 = vld [vmem:[%s330_s2 + $0x20] sm:$0xff]  ;;  %v22_v9 = vld [vmem:[%s330_s2 + $0x28] sm:$0xff] }
   0x3   :  { %v186_v7 = vpack.c.bf16 %v20_v5, %v19_v2 }
   0x4   :  { %184 = vmatpush3.bf16.msra.mxu0 %v183_v4 }
   0x5   :  { %185 = vmatprep.subr.bf16.mxu0 %v238_v3 }
   0x6   :  { %9 = vsyncpa [#allocation4], 0  ;;  %v189_v10 = vpack.c.bf16 %v22_v9, %v21_v8  ;;  %v23_v11 = vld [vmem:[%s330_s2 + $0x30] sm:$0xff]  ;;  %v24_v12 = vld [vmem:[%s330_s2 + $0x38] sm:$0xff]  ;;  %v34_v27 = vstv %s328_s0  ;;  %vm114_vm2 = vcmask 25600  }
   0x7   :  { %v192_v13 = vpack.c.bf16 %v24_v12, %v23_v11  ;;  %v25_v14 = vld [vmem:[%s330_s2 + $0x40] sm:$0xff]  ;;  %v26_v15 = vld [vmem:[%s330_s2 + $0x48] sm:$0xff]  ;;  %v27_v17 = vld [vmem:[%s330_s2 + $0x50] sm:$0xff] }
   0x8   :  { %187 = vmatpush3.bf16.msra.mxu0 %v186_v7  ;;  %v195_v16 = vpack.c.bf16 %v26_v15, %v25_v14  ;;  %v28_v18 = vld [vmem:[%s330_s2 + $0x58] sm:$0xff]  ;;  %v29_v20 = vld [vmem:[%s330_s2 + $0x60] sm:$0xff]  ;;  %v30_v21 = vld [vmem:[%s330_s2 + $0x68] sm:$0xff] }
   0x9   :  { %188 = vmatprep.subr.bf16.mxu0 %v238_v3  ;;  %v198_v19 = vpack.c.bf16 %v28_v18, %v27_v17  ;;  %v201_v22 = vpack.c.bf16 %v30_v21, %v29_v20  ;;  %v31_v23 = vld [vmem:[%s330_s2 + $0x70] sm:$0xff]  ;;  %v32_v24 = vld [vmem:[%s330_s2 + $0x78] sm:$0xff]  ;;  %v16_v26 = vld [vmem:[%s329_s1] sm:$0x3]  ;;  %s241_s2 = smov [#allocation3]  }
   0xa   :  { %v204_v25 = vpack.c.bf16 %v32_v24, %v31_v23  ;;  %s122_s21 = sshll.u32 %s241_s2, 4  ;;  %s123_s21 = int_to_ptr.vmem [resolvable:$true] %s122_s21 }
   0xb   :  { %s214_s0 = scalar_lea.vmem %s123_s21, 32  ;;  %p219_p1 = scmp.lt.s32.totalorder %s123_s21, %s123_s21 }
   0xc   :  { %190 = vmatpush3.bf16.msra.mxu0 %v189_v10  ;;  %p215_p0 = scmp.ne.s32.totalorder %s123_s21, %s214_s0  ;;  %p220_p2 = scmp.lt.s32.totalorder %s214_s0, %s214_s0 }
   0xd   :  { %191 = vmatprep.subr.bf16.mxu0 %v238_v3 }
   0xe   :  { %p221_p3 = por %p220_p2, %p219_p1 }
  0x10   :  { %193 = vmatpush3.bf16.msra.mxu0 %v192_v13  ;;  %p222_p4 = pnand %p221_p3, %p215_p0 }
  0x11   :  { %194 = vmatprep.subr.bf16.mxu0 %v238_v3 }
  0x14   :  { %196 = vmatpush3.bf16.msra.mxu0 %v195_v16 }
  0x15   :  { %197 = vmatprep.subr.bf16.mxu0 %v238_v3 }
  0x18   :  { %199 = vmatpush3.bf16.msra.mxu0 %v198_v19 }
  0x19   :  { %200 = vmatprep.subr.bf16.mxu0 %v238_v3 }
  0x1c   :  { %202 = vmatpush3.bf16.msra.mxu0 %v201_v22 }
  0x1d   :  { %203 = vmatprep.subr.bf16.mxu0 %v238_v3 }
  0x20   :  { %205 = vmatpush3.bf16.msra.mxu0 %v204_v25 }
  0x23   :  { %180 = vmatmul.mubr.f32.vlgmr.msra.gmra.mrb[0].mxu0 %v16_v26 }
  0xf6   :  { %v101_v28 = vpop.f32.mrb[0].mxu0 }
  0xf7   :  { %v102_v29 = vadd.f32 %v101_v28, %v34_v27  ;;  %v181_v30 = vpop.f32.mrb[1].mxu0 }
  0xf9   :  { %v105_v31 = vand.u32 2147483647, %v102_v29  ;;  %vm111_vm1 = vcmp.ge.f32.partialorder %v102_v29, 0.0 }
  0xfb   :  { %v106_v32 = vsub.f32 0.0, %v105_v31 }
  0xfd   :  { %v107_v33 = vmul.f32 1.442695, %v106_v32 }
  0xff   :  { %210 = vpow2.f32 %v107_v33 }
 0x109   :  { %v211_v34 = vpop.eup %210 }
 0x10a   :  { %v109_v35 = vadd.f32 1.0, %v211_v34  ;;  %v112_v37 = vsel %vm111_vm1, 1.0, %v211_v34 }
 0x10c   :  { %212 = vrcp.f32 %v109_v35 }
 0x116   :  { %v213_v36 = vpop.eup %212 }
 0x117   :  { %v113_v38 = vmul.f32 %v213_v36, %v112_v37 }
 0x119   :  { %115 = vst.msk [vmem:[#allocation3] sm:$0x3] %vm114_vm2, %v113_v38 }
 0x11a   :  { %225 = shalt.err (!%p222_p4)
}
 0x11b   :  { %s226_s23 = scalar_lea.hbm %s331_s3, 32 }
 0x11c   :  { %p227_p5 = scmp.ne.s32.totalorder %s331_s3, %s226_s23  ;;  %p230_p6 = scmp.lt.u32.totalorder %s226_s23, %s331_s3 }
 0x11e   :  { %p232_p7 = pnand %p230_p6, %p227_p5 }
 0x120   :  { %235 = shalt.err (!%p232_p7)
}
 0x121   :  { %125 = dma.vmem_to_hbm [thread:$0]  %s123_s21, 32, %s331_s3, [#allocation4]  }
 0x122   :  { %236 = dma.done.wait [#allocation4], 32  }
 0x123   :  { %237 = vsyncadd [#allocation4], 4294967264 }
 0x124   :  { %129 = vsyncpa [#allocation4], 1 }

</bundles_post_ra>
